<compile_context>
chip_gen: v7x
topology: tpu7x:2x2x1
jax: 0.10.0
libtpu: 0.0.40
codegen_flags: <defaults>
</compile_context>

<pallas_src>
import functools

import jax
import jax.numpy as jnp
from jax.experimental import pallas as pl
from jax.experimental.pallas import tpu as pltpu


# ----------------------------------------------------------------------------
# Phase 1: seed mask -> (unscaled) block mask, one batch row per grid step.
# ----------------------------------------------------------------------------
def _block_mask_kernel(mask_ref, bm_ref, *, block_size):
    """block_mask = 1 - maxpool_{k x k, stride 1, pad k//2}(seed_mask)."""
    _, H, W = mask_ref.shape
    k = block_size
    p = k // 2
    f32 = jnp.float32

    # Banded window matrices (from 2-D iotas; tiny, rebuilt per step):
    #   a_h[i, i']  = 1  iff  i - p <= i' <= i - p + k - 1   (output row i)
    #   a_wt[j', j] = 1  iff  j - p <= j' <= j - p + k - 1   (output col j)
    # For even k this window (together with i, j in [0, H) x [0, W)) exactly
    # reproduces PyTorch's [:-1, :-1] trim of the H+1 x W+1 pooled output.
    oi = jax.lax.broadcasted_iota(jnp.int32, (H, H), 0)
    ii = jax.lax.broadcasted_iota(jnp.int32, (H, H), 1)
    a_h = ((ii >= oi - p) & (ii <= oi - p + (k - 1))).astype(f32)
    jj = jax.lax.broadcasted_iota(jnp.int32, (W, W), 0)
    oj = jax.lax.broadcasted_iota(jnp.int32, (W, W), 1)
    a_wt = ((jj >= oj - p) & (jj <= oj - p + (k - 1))).astype(f32)

    m = mask_ref[0]                                       # (H, W), values in {0, 1}
    # counts[i, j] = number of seed 1s inside the k x k window of output (i, j);
    # for a binary mask, (counts > 0) is exactly the max-pool (-inf-padded).
    counts = jnp.dot(a_h, jnp.dot(m, a_wt, preferred_element_type=f32),
                     preferred_element_type=f32)
    pooled = jnp.minimum(counts, 1.0)
    bm_ref[0] = 1.0 - pooled


def _compute_block_mask(seed_mask, block_size):
    N, H, W = seed_mask.shape
    kernel = functools.partial(_block_mask_kernel, block_size=block_size)
    return pl.pallas_call(
        kernel,
        out_shape=jax.ShapeDtypeStruct((N, H, W), jnp.float32),
        grid=(N,),
        in_specs=[pl.BlockSpec((1, H, W), lambda n: (n, 0, 0))],
        out_specs=pl.BlockSpec((1, H, W), lambda n: (n, 0, 0)),
        compiler_params=pltpu.CompilerParams(
            dimension_semantics=("parallel",)),
    )(seed_mask.astype(jnp.float32))


# ----------------------------------------------------------------------------
# Phase 2: out = x * (block_mask * scale)   (HBM-roofline elementwise multiply)
# ----------------------------------------------------------------------------
def _apply_mask_kernel(scale_ref, mask_ref, x_ref, out_ref):
    # scale_ref: (1,) f32 in SMEM.  mask_ref: (1, 1, ht) f32 (channel-resident).
    # x_ref / out_ref: (1, ct, ht) in the activation dtype.
    m = (mask_ref[...] * scale_ref[0]).astype(x_ref.dtype)   # tiny block, cast once
    out_ref[...] = x_ref[...] * m


def _vmem_capacity_bytes():
    try:
        info = pltpu.get_tpu_info()
        for attr in ("vmem_capacity_bytes", "vmem_size_bytes", "vmem_bytes"):
            v = getattr(info, attr, None)
            if v:
                return int(v)
    except Exception:
        pass
    return 64 * 1024 * 1024            # conservative (v7x-sized) default


def _cdiv(a, b):
    return -(-a // b)


def _pick_tiles(C, HW, itemsize, target_bytes):
    """Choose (channel_tile, hw_tile) for the (N, C, HW) hot-path blocks.

    Invariants keeping every block TPU-layout-safe:
      * channel tile is either C itself or a multiple of 8,
      * HW tile is either HW itself or a multiple of 128,
      * block bytes (ct * ht * itemsize) stay at or below `target_bytes`
        (partial edge blocks from cdiv grids are fine for elementwise work).
    """
    if C * HW * itemsize <= target_bytes:
        return C, HW                               # one full (C, HW) slab / batch
    row_bytes = HW * itemsize
    if row_bytes <= target_bytes:
        ct = (target_bytes // row_bytes) // 8 * 8  # whole rows, >=8-channel tiles
        if ct >= 8:
            return ct, HW
    # Fewer than 8 full rows fit (or C < 8): tile HW in 128-lane multiples.
    ct = C if C < 8 else 8
    ht = max(128, (target_bytes // (ct * itemsize)) // 128 * 128)
    return ct, min(ht, HW)


def dropblock2d(x, seed_mask, *, drop_prob, block_size, training=True,
                _force_target_bytes=None):
    """DropBlock2D forward.  x: (N, C, H, W); seed_mask: (N, H, W) in {0, 1}."""
    if (not training) or drop_prob == 0.0:
        return x
    N, C, H, W = x.shape
    HW = H * W

    # Phase 1: unscaled block mask, gridded over the batch (bounded VMEM).
    block_mask = _compute_block_mask(seed_mask, block_size)        # (N, H, W) f32
    # Global renormalisation scale: tiny O(N*H*W) reduction (values are exact
    # {0, 1}), guarded against the degenerate all-dropped case.
    denom = jnp.maximum(jnp.sum(block_mask), jnp.float32(1.0))
    scale = (jnp.float32(N * H * W) / denom).reshape(1)            # SMEM scalar
    mask3 = block_mask.reshape(N, 1, HW)                           # lane-dense

    # Phase 2: generation-aware tiling of the lane-dense (N, C, HW) slab.
    x3 = x.reshape(N, C, HW)
    itemsize = jnp.dtype(x.dtype).itemsize
    if _vmem_capacity_bytes() >= 100 * 1024 * 1024:   # 128 MiB parts (v5e/v6e)
        target_bytes, limit_cap = 8 << 20, 96 << 20
    else:                                             # 64 MiB parts (v7x)
        target_bytes, limit_cap = 6 << 20, 44 << 20
    if _force_target_bytes is not None:               # test hook: force tiling paths
        target_bytes = _force_target_bytes
    ct, ht = _pick_tiles(C, HW, itemsize, target_bytes)
    cpg = _cdiv(C, ct)                                # channel tiles per batch
    hpg = _cdiv(HW, ht)                               # HW tiles per channel tile

    # Double-buffered x-in + out blocks + resident mask blocks + headroom.
    block_bytes = ct * ht * itemsize
    vmem_need = 6 * block_bytes + 4 * ht * 4 + (2 << 20)
    vmem_limit = int(min(limit_cap, max(vmem_need, 16 << 20)))

    out = pl.pallas_call(
        _apply_mask_kernel,
        out_shape=jax.ShapeDtypeStruct((N, C, HW), x.dtype),
        # (N, C-tiles) flattened into one parallel axis -> even 2-TC split on
        # v7x even when N == 1; HW tiles form the inner (parallel) axis.
        grid=(N * cpg, hpg),
        in_specs=[
            pl.BlockSpec(memory_space=pltpu.MemorySpace.SMEM),              # scale
            pl.BlockSpec((1, 1, ht), lambda i, h: (i // cpg, 0, h)),        # mask
            pl.BlockSpec((1, ct, ht), lambda i, h: (i // cpg, i % cpg, h)),  # x
        ],
        out_specs=pl.BlockSpec((1, ct, ht), lambda i, h: (i // cpg, i % cpg, h)),
        compiler_params=pltpu.CompilerParams(
            dimension_semantics=("parallel", "parallel"),
            vmem_limit_bytes=vmem_limit,
        ),
        # NOTE: on HBM-tight parts (v5e), callers that donate x can also pass
        # input_output_aliases={2: 0} to write the product in place.
    )(scale, mask3, x3)
    return out.reshape(N, C, H, W)


# ----------------------------------------------------------------------------
# Pure-JAX reference mirroring the PyTorch forward exactly.
# ----------------------------------------------------------------------------
def _reference(x, seed_mask, *, block_size):
    k = block_size
    p = k // 2
    pooled = jax.lax.reduce_window(
        seed_mask.astype(jnp.float32), -jnp.inf, jax.lax.max,
        window_dimensions=(1, k, k), window_strides=(1, 1, 1),
        padding=((0, 0), (p, p), (p, p)))
    if k % 2 == 0:                       # PyTorch trims the last row/col
        pooled = pooled[:, :-1, :-1]
    block_mask = 1.0 - pooled
    out = x * block_mask[:, None, :, :]
    denom = jnp.maximum(jnp.sum(block_mask), 1.0)
    return out * block_mask.size / denom


if __name__ == "__main__":
    key = jax.random.PRNGKey(0)
    kx, km = jax.random.split(key)
    drop_prob = 0.2

    # Small canonical shape; odd and even block sizes (even exercises the trim).
    N, C, H, W = 2, 4, 16, 16
    x = jax.random.normal(kx, (N, C, H, W), dtype=jnp.float32)
    seed_mask = None
    for block_size in (3, 4):
        gamma = drop_prob / (block_size ** 2)
        # torch.rand(N, H, W) < gamma -> Bernoulli seed mask (host-side glue)
        seed_mask = (jax.random.uniform(km, (N, H, W)) < gamma).astype(jnp.float32)
        out = dropblock2d(x, seed_mask, drop_prob=drop_prob,
                          block_size=block_size, training=True)
        out = jax.block_until_ready(out)
        ref = _reference(x, seed_mask, block_size=block_size)
        assert out.shape == x.shape and out.dtype == x.dtype
        assert jnp.allclose(out, ref, atol=1e-5, rtol=1e-5), \
            f"mismatch vs reference (block_size={block_size})"

    # Exercise the channel-tiled and HW-tiled phase-2 paths with a small
    # forced byte target (same code paths that large shapes take on real HW).
    for (tN, tC, tH, tW), tgt in (((2, 32, 32, 32), 64 * 1024),   # channel tiling
                                  ((2, 4, 64, 64), 16 * 1024)):   # HW tiling
        kx2, km2 = jax.random.split(jax.random.PRNGKey(tC))
        xt = jax.random.normal(kx2, (tN, tC, tH, tW), dtype=jnp.float32)
        seed_t = (jax.random.uniform(km2, (tN, tH, tW)) < drop_prob / 9.0
                  ).astype(jnp.float32)
        out_t = jax.block_until_ready(
            dropblock2d(xt, seed_t, drop_prob=drop_prob, block_size=3,
                        training=True, _force_target_bytes=tgt))
        ref_t = _reference(xt, seed_t, block_size=3)
        assert jnp.allclose(out_t, ref_t, atol=1e-5, rtol=1e-5), \
            f"mismatch vs reference (tiled path, shape={(tN, tC, tH, tW)})"

    # Eval / zero-prob passthrough matches the module.
    assert dropblock2d(x, seed_mask, drop_prob=drop_prob,
                       block_size=3, training=False) is x

    print("KERNEL_OK")
</pallas_src>

<mosaic_0001>
module attributes {stable_mosaic.version = 11 : i64} {
  func.func @_block_mask_kernel(%arg0: i32, %arg1: memref<1x16x16xf32, #tpu.memory_space<vmem>>, %arg2: memref<1x16x16xf32, #tpu.memory_space<vmem>>) attributes {dimension_semantics = [#tpu.dimension_semantics<parallel>], iteration_bounds = array<i64: 2>, scalar_prefetch = 0 : i64, scratch_operands = 0 : i64, tpu.core_type = #tpu.core_type<tc>, window_params = [{transform_indices = @transform_0, window_bounds = array<i64: 1, 16, 16>}, {transform_indices = @transform_1, window_bounds = array<i64: 1, 16, 16>}]} {
    %0 = tpu.iota {dimensions = array<i32: 0>} : vector<16x16xi32>
    %1 = tpu.iota {dimensions = array<i32: 1>} : vector<16x16xi32>
    %c1_i32 = arith.constant 1 : i32
    %2 = vector.broadcast %c1_i32 : i32 to vector<16x16xi32>
    %3 = arith.subi %0, %2 : vector<16x16xi32>
    %4 = arith.cmpi sge, %1, %3 : vector<16x16xi32>
    %c1_i32_0 = arith.constant 1 : i32
    %5 = vector.broadcast %c1_i32_0 : i32 to vector<16x16xi32>
    %6 = arith.subi %0, %5 : vector<16x16xi32>
    %c2_i32 = arith.constant 2 : i32
    %7 = vector.broadcast %c2_i32 : i32 to vector<16x16xi32>
    %8 = arith.addi %6, %7 : vector<16x16xi32>
    %9 = arith.cmpi sle, %1, %8 : vector<16x16xi32>
    %10 = arith.andi %4, %9 : vector<16x16xi1>
    %11 = arith.extui %10 : vector<16x16xi1> to vector<16x16xi32>
    %12 = arith.sitofp %11 : vector<16x16xi32> to vector<16x16xf32>
    %13 = tpu.iota {dimensions = array<i32: 0>} : vector<16x16xi32>
    %14 = tpu.iota {dimensions = array<i32: 1>} : vector<16x16xi32>
    %c1_i32_1 = arith.constant 1 : i32
    %15 = vector.broadcast %c1_i32_1 : i32 to vector<16x16xi32>
    %16 = arith.subi %14, %15 : vector<16x16xi32>
    %17 = arith.cmpi sge, %13, %16 : vector<16x16xi32>
    %c1_i32_2 = arith.constant 1 : i32
    %18 = vector.broadcast %c1_i32_2 : i32 to vector<16x16xi32>
    %19 = arith.subi %14, %18 : vector<16x16xi32>
    %c2_i32_3 = arith.constant 2 : i32
    %20 = vector.broadcast %c2_i32_3 : i32 to vector<16x16xi32>
    %21 = arith.addi %19, %20 : vector<16x16xi32>
    %22 = arith.cmpi sle, %13, %21 : vector<16x16xi32>
    %23 = arith.andi %17, %22 : vector<16x16xi1>
    %24 = arith.extui %23 : vector<16x16xi1> to vector<16x16xi32>
    %25 = arith.sitofp %24 : vector<16x16xi32> to vector<16x16xf32>
    %c0 = arith.constant 0 : index
    %c0_4 = arith.constant 0 : index
    %c0_5 = arith.constant 0 : index
    %26 = vector.load %arg1[%c0, %c0_4, %c0_5] : memref<1x16x16xf32, #tpu.memory_space<vmem>>, vector<1x16x16xf32>
    %27 = vector.shape_cast %26 : vector<1x16x16xf32> to vector<16x16xf32>
    %cst = arith.constant dense<0.000000e+00> : vector<16x16xf32>
    %28 = tpu.matmul %27, %25, %cst {dimension_numbers = #tpu.dot_dimension_numbers<[1], [0], [0], [1], [0, 0, 1, 1], [], []>} : vector<16x16xf32>, vector<16x16xf32>, vector<16x16xf32> -> vector<16x16xf32>
    %cst_6 = arith.constant dense<0.000000e+00> : vector<16x16xf32>
    %29 = tpu.matmul %12, %28, %cst_6 {dimension_numbers = #tpu.dot_dimension_numbers<[1], [0], [0], [1], [0, 0, 1, 1], [], []>} : vector<16x16xf32>, vector<16x16xf32>, vector<16x16xf32> -> vector<16x16xf32>
    %cst_7 = arith.constant 1.000000e+00 : f32
    %30 = vector.broadcast %cst_7 : f32 to vector<16x16xf32>
    %31 = arith.minimumf %29, %30 : vector<16x16xf32>
    %cst_8 = arith.constant 1.000000e+00 : f32
    %32 = vector.broadcast %cst_8 : f32 to vector<16x16xf32>
    %33 = arith.subf %32, %31 : vector<16x16xf32>
    %c0_9 = arith.constant 0 : index
    %c0_10 = arith.constant 0 : index
    %c0_11 = arith.constant 0 : index
    %34 = vector.load %arg2[%c0_9, %c0_10, %c0_11] : memref<1x16x16xf32, #tpu.memory_space<vmem>>, vector<1x16x16xf32>
    %35 = vector.shape_cast %34 : vector<1x16x16xf32> to vector<16x16xf32>
    %36 = vector.shape_cast %33 : vector<16x16xf32> to vector<1x16x16xf32>
    tpu.vector_store %arg2[%c0_9, %c0_10, %c0_11], %36 {strides = array<i32>} : memref<1x16x16xf32, #tpu.memory_space<vmem>>, vector<1x16x16xf32>,
    return
  }
  func.func @transform_0(%arg0: i32) -> (i32, i32, i32) {
    %c0_i32 = arith.constant 0 : i32
    %c0_i32_0 = arith.constant 0 : i32
    %c0_i32_1 = arith.constant 0 : i32
    return %arg0, %c0_i32, %c0_i32_0 : i32, i32, i32
  }
  func.func @transform_1(%arg0: i32) -> (i32, i32, i32) {
    %c0_i32 = arith.constant 0 : i32
    %c0_i32_0 = arith.constant 0 : i32
    %c0_i32_1 = arith.constant 0 : i32
    return %arg0, %c0_i32, %c0_i32_0 : i32, i32, i32
  }
}

</mosaic_0001>

<bundles_post_ra>
// kernel: tpu_custom_call.1
= control target key start
LH: loop header
LB: loop body
LE: loop exit
PB: predicated region body
PF: predicated region fallthrough
CT: control target
= control target key end

     0   :  { %6 = vsyncpa [#allocation3], 0  ;;  %s823_s0 = inlined_call_operand.hbm [shape: f32[2,16,16], index: 0, kind: input, shape index: {}]   ;;  %s824_s1 = inlined_call_operand.hbm [shape: f32[2,16,16], index: 1, kind: output, shape index: {}]  }
   0x1   :  { %8 = vsyncpa [#allocation3 + $0x1], 0 }
   0x2   :  { %9 = vsyncpa [#allocation4], 0 }
   0x3   :  { %11 = vsyncpa [#allocation4 + $0x1], 0  ;;  %s651_s6 = smov 0   ;;  %s653_s7 = smov 0  }
   0x4   :  { %s655_s8 = smov 0   ;;  %s657_s9 = smov 0  }
   0x5 LB: > { %s672_s10 = sadd.s32 4294967295, %s631_s9   ;;  %s424_s11 = sadd.s32 4294967294, %s631_s9   ;;  %s631_s9 = sphi %s657_s9, %s837_s9   ;;  %s627_s8 = sphi %s655_s8, %s836_s8   ;;  %s623_s7 = sphi %s653_s7, %s835_s7   ;;  %s619_s6 = sphi %s651_s6, %s834_s6  }
   0x6   : > { %s676_s12 = sadd.s32 1, %s631_s9   ;;  %s24_s13 = sadd.s32 1, %s627_s8 }
   0x7   : > { %s21_s14 = ssub.s32 %s631_s9, %s676_s12  ;;  %p31_p0 = scmp.ne.s32.totalorder %s627_s8, %s623_s7 }
   0x8   : > { %p22_p1 = scmp.eq.s32.totalorder %s21_s14, 0  ;;  %p32_p2 = scmp.eq.s32.totalorder %s631_s9, 0 }
   0x9   : > { %p37_p3 = scmp.ne.s32.totalorder %s623_s7, %s619_s6  ;;  %p38_p4 = scmp.eq.s32.totalorder %s672_s10, 0 }
   0xa   : > { %s688_s15 = scalar_select %p22_p1, %s627_s8, %s24_s13  }
   0xb   : > { %p690_p5 = por %p32_p2, %p31_p0  ;;  %p694_p6 = por %p38_p4, %p37_p3 }
   0xc   : > { %p61_p7 = scmp.eq.s32.totalorder %s672_s10, 1  ;;  %p67_p8 = scmp.eq.s32.totalorder %s424_s11, 1 }
   0xd   : > { %p495_p10 = scmp.lt.s32.totalorder %s631_s9, 2  ;;  %s87_s20 = sand.u32 1, %s627_s8  }
   0xe   : > { %p701_p11 = por %p61_p7, %p31_p0  ;;  %p705_p12 = por %p67_p8, %p37_p3 }
   0xf   : > { %s451_s21 = sshll.u32 %s631_s9, 8  ;;  %s427_s22 = sshll.u32 %s87_s20, 4 }
  0x10   : > { %s828_s18 = scalar_select %p701_p11, 1, 0 }
  0x11   : > { %s829_s19 = scalar_select %p705_p12, 1, 0 }
  0x12   : > { %s714_s25 = scalar_lea.hbm %s823_s0, %s451_s21  ;;  %s91_s26 = scalar_lea.vmem [#allocation2], %s427_s22 }
  0x13   : > { %s98_s27 = sshll.u32 %s91_s26, 4  ;;  %p718_p13 = pnand %p495_p10, %p690_p5  ;;  %s722_s27 = int_to_ptr.vmem [resolvable:$true] %s98_s27 }
  0x14   : > { %s724_s29 = scalar_lea.sflag [#allocation3], %s87_s20  ;;  %s535_s30 = scalar_lea.hbm %s714_s25, 256 }
  0x15   : > { %p536_p0 = scmp.ne.s32.totalorder %s714_s25, %s535_s30  ;;  %p537_p1 = pneg %p718_p13 }
  0x16   : > { %s540_s4 = scalar_lea.hbm %s823_s0, 512  ;;  %p541_p4 = scmp.lt.u32.totalorder %s714_s25, %s823_s0 }
  0x17   : > { %p538_p2 = pnand %p537_p1, %p536_p0  ;;  %p542_p5 = scmp.lt.u32.totalorder %s540_s4, %s535_s30 }
  0x18   : > { %p544_p8 = scmp.lt.u32.totalorder %s535_s30, %s714_s25 }
  0x19   : > { %p539_p3 = pneg %p538_p2  ;;  %p543_p7 = por %p542_p5, %p541_p4 }
  0x1b   : > { %p545_p10 = por %p544_p8, %p543_p7 }
  0x1d   : > { %p546_p9 = pnand %p545_p10, %p539_p3 }
  0x1f   : > { %549 = shalt.err (!%p546_p9)
}
  0x20   : > { %s550_s13 = scalar_lea.vmem %s722_s27, 256  ;;  %s633_s14 = smov [#allocation2]  }
  0x21   : > { %p551_p0 = scmp.ne.s32.totalorder %s722_s27, %s550_s13  ;;  %s555_s16 = sshll.u32 %s633_s14, 4  ;;  %s556_s16 = int_to_ptr.vmem [resolvable:$false] %s555_s16 }
  0x22   : > { %s557_s20 = scalar_lea.vmem %s556_s16, 512  ;;  %p558_p11 = scmp.lt.s32.totalorder %s722_s27, %s556_s16 }
  0x23   : > { %p553_p2 = pnand %p551_p0, %p537_p1  ;;  %p559_p4 = scmp.lt.s32.totalorder %s557_s20, %s550_s13 }
  0x25   : > { %p554_p12 = pneg %p553_p2  ;;  %p560_p5 = por %p559_p4, %p558_p11 }
  0x27   : > { %p561_p7 = pnand %p560_p5, %p554_p12 }
  0x29   : > { %564 = shalt.err (!%p561_p7)
}
  0x2a   : > { %s634_s21 = smov 128   ;;  %s635_s22 = smov 8  }
  0x2b   : > { %490 = dma.hbm_to_vmem [thread:$0]  (!%p718_p13), %s714_s25, 256, %s722_s27, %s724_s29, %s634_s21, %s634_s21, %s635_s22  }
  0x2c   : > { %p430_p9 = scmp.ge.s32.totalorder %s631_s9, 1  ;;  %p106_p1 = scmp.lt.s32.totalorder %s631_s9, 3 }
  0x2e   : > { %p107_p3 = pnand %p430_p9, %p106_p1 }
  0x2f   : > { %s755_s23 = sand.u32 (!%p107_p3), 1, %s623_s7  }
  0x30   : > { %110 = sbr.rel (%p107_p3) target bundleno = 523 (0x20b), region = 24  ;;  %s431_s24 = sshll.u32 (!%p107_p3), %s755_s23, 4 }
  0x31   : > { %s113_s26 = scalar_lea.sflag (!%p107_p3), [#allocation3], %s755_s23  ;;  %s116_s30 = scalar_lea.vmem (!%p107_p3), [#allocation2], %s431_s24 }
  0x37   : > { %610 = dma.done.wait (%p694_p6), %s113_s26, 256  }
  0x38   : > { %612 = vsyncadd (%p694_p6), %s113_s26, 4294967040  ;;  %v135_v0 = vlaneseq  ;;  %vm168_vm0 = vcmask 130048   ;;  %v166_v6 = vld [vmem:[%s116_s30] sm:$0xff]  ;;  %v636_v7 = vmov 1.0|1.0   ;;  %v167_v8 = vld [vmem:[%s116_s30 + $0x8] sm:$0xff] }
  0x39   : > { %465 = vmatprep.mubr.msk.f32.mxu0 %vm168_vm0, %v166_v6  ;;  %v637_v11 = vmov 0.0   ;;  %s134_s17 = scalar_lea.vmem [#allocation5], %s431_s24  ;;  %s452_s27 = sshll.u32 %s672_s10, 8 }
  0x3a   : > { %v136_v1 = vshrl.u32 %v135_v0, 7  ;;  %v139_v2 = vand.u32 127, %v135_v0  ;;  %s351_s25 = sshll.u32 %s134_s17, 4  ;;  %s775_s2 = scalar_lea.hbm %s824_s1, %s452_s27  ;;  %s777_s25 = int_to_ptr.vmem [resolvable:$true] %s351_s25 }
  0x3b   : > { %s338_s10 = scalar_lea.sflag [#allocation4], %s755_s23  ;;  %s565_s3 = scalar_lea.vmem %s777_s25, 256 }
  0x3c   : > { %v137_v3 = vadd.s32 8, %v136_v1  ;;  %v437_v4 = vadd.s32 4294967295, %v139_v2  ;;  %v433_v9 = vadd.s32 4294967295, %v136_v1  ;;  %p566_p6 = scmp.ne.s32.totalorder %s777_s25, %s565_s3  ;;  %p831_p11 = scmp.ne.s32.totalorder %s828_s18, 0 }
  0x3d   : > { %s638_s4 = smov [#allocation5]  }
  0x3e   : > { %vm155_vm1 = vcmp.ge.s32.totalorder %v136_v1, %v437_v4  ;;  %v157_v5 = vadd.s32 2, %v437_v4  ;;  %vm156_vm2 = vcmp.ge.s32.totalorder %v137_v3, %v437_v4  ;;  %v144_v10 = vadd.s32 2, %v433_v9  ;;  %p567_p12 = pnand %p566_p6, %p831_p11  ;;  %s569_s5 = sshll.u32 %s638_s4, 4  ;;  %s570_s5 = int_to_ptr.vmem [resolvable:$false] %s569_s5 }
  0x3f   : > { %vm142_vm8 = vcmp.ge.s32.totalorder %v139_v2, %v433_v9  ;;  %v434_v13 = vadd.s32 4294967295, %v137_v3  ;;  %s571_s11 = scalar_lea.vmem %s570_s5, 512  ;;  %p572_p8 = scmp.lt.s32.totalorder %s777_s25, %s570_s5 }
  0x40   : > { %vm158_vm3 = vcmp.le.s32.totalorder %v136_v1, %v157_v5  ;;  %vm159_vm4 = vcmp.le.s32.totalorder %v137_v3, %v157_v5  ;;  %vm146_vm9 = vcmp.le.s32.totalorder %v139_v2, %v144_v10  ;;  %p568_p13 = pneg %p567_p12  ;;  %p573_p10 = scmp.lt.s32.totalorder %s571_s11, %s565_s3 }
  0x41   : > { %vm160_vm5 = vmand %vm155_vm1, %vm158_vm3  ;;  %v145_v14 = vadd.s32 2, %v434_v13  ;;  %vm143_vm11 = vcmp.ge.s32.totalorder %v139_v2, %v434_v13 }
  0x42   : > { %vm161_vm6 = vmand %vm156_vm2, %vm159_vm4  ;;  %p574_p0 = por %p573_p10, %p572_p8 }
  0x43   : > { %vm475_vm7 = vmpackc.low %vm161_vm6, %vm160_vm5  ;;  %vm147_vm12 = vcmp.le.s32.totalorder %v139_v2, %v145_v14 }
  0x44   : > { %476 = vmatprep.subr.msk.bf16.mxu0 %vm475_vm7, %v636_v7  ;;  %vm148_vm10 = vmand %vm142_vm8, %vm146_vm9  ;;  %p575_p2 = pnand %p574_p0, %p568_p13 }
  0x45   : > { %478 = vmatpush3.bf16.msk.msra.mxu0 %vm475_vm7, %v636_v7  ;;  %v435_v12 = vsel %vm148_vm10, 1.0, %v637_v11  ;;  %vm149_vm13 = vmand %vm143_vm11, %vm147_vm12 }
  0x46   : > { %472 = vmatprep.mubr.msk.f32.mxu1 %vm168_vm0, %v435_v12  ;;  %v436_v18 = vsel %vm149_vm13, 1.0, %v637_v11 }
  0x48   : > { %466 = vmatmul.mubr.msk.f32.vlgmr.msra.gmra.mrb[0].mxu0 %vm168_vm0, %v167_v8 }
 0x11b   : > { %v467_v15 = vpop.f32.mrb[0].mxu0 }
 0x11c   : > { %v241_v16 = vpop.f32.mrb[1].mxu0 }
 0x11d   : > { %v479_v17 = vpack.c.bf16 %v467_v15, %v241_v16 }
 0x11f   : > { %480 = vmatprep.subr.bf16.mxu1 %v479_v17 }
 0x120   : > { %482 = vmatpush3.bf16.msra.mxu1 %v479_v17 }
 0x123   : > { %473 = vmatmul.mubr.msk.f32.vlgmr.msra.gmra.mrb[0].mxu1 %vm168_vm0, %v436_v18 }
 0x1f6   : > { %v474_v19 = vpop.f32.mrb[0].mxu1 }
 0x1f7   : > { %v332_v20 = vmin.f32 %v474_v19, 1.0  ;;  %v322_v21 = vpop.f32.mrb[1].mxu1 }
 0x1f8   : > { %v331_v22 = vmin.f32 %v322_v21, 1.0 }
 0x1f9   : > { %v334_v23 = vsub.f32 1.0, %v332_v20 }
 0x1fa   : > { %v333_v24 = vsub.f32 1.0, %v331_v22 }
 0x1fb   : > { %336 = vst.msk [vmem:[%s134_s17 + $0x8] sm:$0xff] %vm168_vm0, %v334_v23 }
 0x1fc   : > { %335 = vst.msk [vmem:[%s134_s17] sm:$0xff] %vm168_vm0, %v333_v24 }
 0x1fd   : > { %578 = shalt.err (!%p575_p2)
}
 0x1fe   : > { %s579_s13 = scalar_lea.hbm %s775_s2, 256  ;;  %s583_s20 = scalar_lea.hbm %s824_s1, 512 }
 0x1ff   : > { %p580_p4 = scmp.ne.s32.totalorder %s775_s2, %s579_s13  ;;  %p584_p9 = scmp.lt.u32.totalorder %s775_s2, %s824_s1 }
 0x200   : > { %p585_p1 = scmp.lt.u32.totalorder %s583_s20, %s579_s13  ;;  %p587_p6 = scmp.lt.u32.totalorder %s579_s13, %s775_s2 }
 0x201   : > { %p581_p5 = pnand %p580_p4, %p831_p11 }
 0x202   : > { %p586_p3 = por %p585_p1, %p584_p9 }
 0x203   : > { %p582_p7 = pneg %p581_p5 }
 0x204   : > { %p588_p12 = por %p587_p6, %p586_p3 }
 0x206   : > { %p589_p13 = pnand %p588_p12, %p582_p7 }
 0x208   : > { %592 = shalt.err (!%p589_p13)
}
 0x209   : > { %s639_s24 = smov 128   ;;  %s640_s26 = smov 8  }
 0x20a   : > { %485 = dma.vmem_to_hbm [thread:$0]  (%p831_p11), %s777_s25, 256, %s775_s2, %s338_s10, %s639_s24, %s639_s24, %s640_s26  }
 0x20b PF: > { %s366_s30 = sand.u32 1, %s619_s6   ;;  %p832_p8 = scmp.ne.s32.totalorder %s829_s19, 0 }
 0x20c   : > { %p833_p10 = scmp.ge.s32.totalorder %s631_s9, 2  ;;  %s367_s17 = scalar_lea.sflag [#allocation4], %s366_s30 }
 0x20e   : > { %p492_p0 = pnand %p833_p10, %p832_p8 }
 0x210   : > { %614 = dma.done.wait (!%p492_p0), %s367_s17, 256  }
 0x211   : > { %616 = vsyncadd (!%p492_p0), %s367_s17, 4294967040  ;;  %p14_p2 = scmp.ge.s32.totalorder %s676_s12, 4   ;;  %s834_s6 = smov %s623_s7 }
 0x212   : > { %s835_s7 = smov %s627_s8  ;;  %s836_s8 = smov %s688_s15 }
 0x213   : > { %s837_s9 = smov %s676_s12  ;;  %16 = sbr.rel (!%p14_p2) target bundleno = 5 (0x5), region = 69 }
 0x21a   :  { %372 = vsyncpa [#allocation3], 1 }
 0x21b   :  { %374 = vsyncpa [#allocation3 + $0x1], 1 }
 0x21c   :  { %375 = vsyncpa [#allocation4], 1 }
 0x21d   :  { %377 = vsyncpa [#allocation4 + $0x1], 1 }

</bundles_post_ra>
